<compile_context>
chip_gen: v5e
topology: v5e:2x2
jax: 0.10.0
libtpu: 0.0.40
codegen_flags: <defaults>
</compile_context>

<pallas_src>
import functools

import jax
import jax.numpy as jnp
from jax.experimental import pallas as pl
from jax.experimental.pallas import tpu as pltpu


def _round_up(x, m):
    return (x + m - 1) // m * m


# ----------------------------------------------------------------------------
# Fused kernel: (tm, Cin) @ (Cin, Cout) + bias -> LayerNorm(Cout) -> (tm, Cout)
# ----------------------------------------------------------------------------

def _trim_kernel(x_ref, w_ref, c_ref, o_ref, *, eps, inv_cout):
    # Cast activations to bf16 in-kernel (hidden under DMA/MXU), f32 MXU accum.
    x = x_ref[...].astype(jnp.bfloat16)
    y = jnp.dot(x, w_ref[...], preferred_element_type=jnp.float32)
    y = y + c_ref[0:1, :]                      # conv bias (participates in mean)

    # One-pass LayerNorm statistics over the full Cout (resident in the tile).
    mu = jnp.sum(y, axis=-1, keepdims=True) * inv_cout
    ms = jnp.sum(y * y, axis=-1, keepdims=True) * inv_cout
    var = ms - mu * mu
    inv = jax.lax.rsqrt(var + eps)
    o_ref[...] = ((y - mu) * inv * c_ref[1:2, :] + c_ref[2:3, :]).astype(o_ref.dtype)


def trim_layer_forward(x, params, *, eps=1e-5, out_dtype=jnp.bfloat16):
    """x: (B, L, Cin) float32 -> (B, L, Cout) out_dtype (default bf16)."""
    B, L, Cin = x.shape
    w = params["w"]                                   # (Cin, Cout) bf16, pre-transposed
    Cout = w.shape[1]
    # Pack conv bias, LN gamma, LN beta into a single (3, Cout) f32 constant.
    consts = jnp.stack(
        [params["b"], params["gamma"], params["beta"]]).astype(jnp.float32)

    M = B * L
    # Large row tile (amortizes per-step overhead); multiple of 16 keeps both
    # f32 input (8-sublane) and bf16 output (16-sublane packing) layouts happy.
    tm = min(1024, _round_up(M, 16))
    grid_m = pl.cdiv(M, tm)                           # ragged tail handled by Pallas masking

    x2 = x.reshape(M, Cin)                            # stays f32; cast inside kernel

    out_bytes = jnp.dtype(out_dtype).itemsize
    kernel = functools.partial(_trim_kernel, eps=eps, inv_cout=1.0 / Cout)
    out = pl.pallas_call(
        kernel,
        out_shape=jax.ShapeDtypeStruct((M, Cout), out_dtype),
        grid_spec=pltpu.PrefetchScalarGridSpec(
            num_scalar_prefetch=0,
            grid=(grid_m,),
            in_specs=[
                pl.BlockSpec((tm, Cin), lambda i: (i, 0)),     # activations (f32)
                pl.BlockSpec((Cin, Cout), lambda i: (0, 0)),   # weight (bf16, resident)
                pl.BlockSpec((3, Cout), lambda i: (0, 0)),     # bias/gamma/beta packed
            ],
            out_specs=pl.BlockSpec((tm, Cout), lambda i: (i, 0)),
        ),
        compiler_params=pltpu.CompilerParams(
            dimension_semantics=("parallel",)),
        cost_estimate=pl.CostEstimate(
            flops=2 * M * Cin * Cout + 8 * M * Cout,
            transcendentals=M,
            bytes_accessed=M * Cin * 4 + Cin * Cout * 2 + 3 * Cout * 4
                           + M * Cout * out_bytes),
    )(x2, w, consts)

    return out.reshape(B, L, Cout)


# ----------------------------------------------------------------------------
# Parameter init (mirrors nn.Conv1d(Cin, Cout, 1) + nn.LayerNorm(Cout))
# ----------------------------------------------------------------------------

def init_params(key, in_channels, out_channels):
    k1, k2, k3, k4 = jax.random.split(key, 4)
    # torch Conv1d weight layout: (Cout, Cin, 1); pre-transpose to (Cin, Cout)
    # and pre-cast to bf16 once so the kernel never re-transposes per call.
    w_torch = 0.05 * jax.random.normal(k1, (out_channels, in_channels, 1),
                                       jnp.float32)
    return dict(
        w=jnp.transpose(w_torch[:, :, 0], (1, 0)).astype(jnp.bfloat16),
        b=0.05 * jax.random.normal(k2, (out_channels,), jnp.float32),
        gamma=1.0 + 0.05 * jax.random.normal(k3, (out_channels,), jnp.float32),
        beta=0.05 * jax.random.normal(k4, (out_channels,), jnp.float32),
    )


def reference_forward(x, params, eps=1e-5):
    """Plain-JAX f32 reference (same bf16 operand quantization as the kernel)."""
    w32 = params["w"].astype(jnp.float32)
    y = jnp.einsum("blc,cd->bld",
                   x.astype(jnp.bfloat16).astype(jnp.float32), w32) + params["b"]
    mu = jnp.mean(y, axis=-1, keepdims=True)
    var = jnp.mean((y - mu) ** 2, axis=-1, keepdims=True)
    return (y - mu) * jax.lax.rsqrt(var + eps) * params["gamma"] + params["beta"]


# ----------------------------------------------------------------------------
# Main
# ----------------------------------------------------------------------------

if __name__ == "__main__":
    B, L = 2, 16
    in_channels, out_channels = 64, 128   # Cout=128 keeps the output lane-dense

    key = jax.random.PRNGKey(0)
    pkey, xkey = jax.random.split(key)
    params = init_params(pkey, in_channels, out_channels)
    x = jax.random.normal(xkey, (B, L, in_channels), jnp.float32)

    fwd = jax.jit(trim_layer_forward)
    out = jax.block_until_ready(fwd(x, params))

    assert out.shape == (B, L, out_channels), out.shape
    assert out.dtype == jnp.bfloat16
    out_f32 = out.astype(jnp.float32)
    assert bool(jnp.all(jnp.isfinite(out_f32)))

    # bf16 output + bf16 matmul operands -> compare with bf16-level tolerance.
    # TODO(synk): pass out_dtype=jnp.float32 if the consumer requires torch-exact f32 output.
    ref = reference_forward(x, params)
    err = float(jnp.max(jnp.abs(out_f32 - ref)))
    assert err < 3e-2, err

    print("KERNEL_OK")
</pallas_src>

<mosaic_0001>
module attributes {stable_mosaic.version = 11 : i64} {
  func.func @_trim_kernel(%arg0: i32, %arg1: memref<32x64xf32, #tpu.memory_space<vmem>>, %arg2: memref<64x128xbf16, #tpu.memory_space<vmem>>, %arg3: memref<3x128xf32, #tpu.memory_space<vmem>>, %arg4: memref<32x128xbf16, #tpu.memory_space<vmem>>) attributes {dimension_semantics = [#tpu.dimension_semantics<parallel>], iteration_bounds = array<i64: 1>, scalar_prefetch = 0 : i64, scratch_operands = 0 : i64, tpu.core_type = #tpu.core_type<tc>, window_params = [{transform_indices = @transform_0, window_bounds = array<i64: 32, 64>}, {pipeline_mode = #tpu.pipeline_mode<synchronous>, transform_indices = @transform_1, window_bounds = array<i64: 64, 128>}, {pipeline_mode = #tpu.pipeline_mode<synchronous>, transform_indices = @transform_2, window_bounds = array<i64: 3, 128>}, {transform_indices = @transform_3, window_bounds = array<i64: 32, 128>}]} {
    %c0 = arith.constant 0 : index
    %c0_0 = arith.constant 0 : index
    %0 = vector.load %arg1[%c0, %c0_0] : memref<32x64xf32, #tpu.memory_space<vmem>>, vector<32x64xf32>
    %1 = arith.truncf %0 : vector<32x64xf32> to vector<32x64xbf16>
    %c0_1 = arith.constant 0 : index
    %c0_2 = arith.constant 0 : index
    %2 = vector.load %arg2[%c0_1, %c0_2] : memref<64x128xbf16, #tpu.memory_space<vmem>>, vector<64x128xbf16>
    %cst = arith.constant dense<0.000000e+00> : vector<32x128xf32>
    %3 = tpu.matmul %1, %2, %cst {dimension_numbers = #tpu.dot_dimension_numbers<[1], [0], [0], [1], [0, 0, 1, 1], [], []>} : vector<32x64xbf16>, vector<64x128xbf16>, vector<32x128xf32> -> vector<32x128xf32>
    %c0_3 = arith.constant 0 : index
    %c0_4 = arith.constant 0 : index
    %4 = vector.load %arg3[%c0_3, %c0_4] : memref<3x128xf32, #tpu.memory_space<vmem>>, vector<1x128xf32>
    %5 = vector.broadcast %4 : vector<1x128xf32> to vector<32x128xf32>
    %6 = arith.addf %3, %5 : vector<32x128xf32>
    %cst_5 = arith.constant dense<0.000000e+00> : vector<32xf32>
    %7 = vector.multi_reduction <add>, %6, %cst_5 [1] : vector<32x128xf32> to vector<32xf32>
    %8 = vector.shape_cast %7 : vector<32xf32> to vector<32x1xf32>
    %cst_6 = arith.constant 7.812500e-03 : f32
    %9 = vector.broadcast %cst_6 : f32 to vector<32x1xf32>
    %10 = arith.mulf %8, %9 : vector<32x1xf32>
    %11 = arith.mulf %6, %6 : vector<32x128xf32>
    %cst_7 = arith.constant dense<0.000000e+00> : vector<32xf32>
    %12 = vector.multi_reduction <add>, %11, %cst_7 [1] : vector<32x128xf32> to vector<32xf32>
    %13 = vector.shape_cast %12 : vector<32xf32> to vector<32x1xf32>
    %cst_8 = arith.constant 7.812500e-03 : f32
    %14 = vector.broadcast %cst_8 : f32 to vector<32x1xf32>
    %15 = arith.mulf %13, %14 : vector<32x1xf32>
    %16 = arith.mulf %10, %10 : vector<32x1xf32>
    %17 = arith.subf %15, %16 : vector<32x1xf32>
    %cst_9 = arith.constant 9.99999974E-6 : f32
    %18 = vector.broadcast %cst_9 : f32 to vector<32x1xf32>
    %19 = arith.addf %17, %18 : vector<32x1xf32>
    %20 = math.rsqrt %19 : vector<32x1xf32>
    %21 = vector.broadcast %10 : vector<32x1xf32> to vector<32x128xf32>
    %22 = arith.subf %6, %21 : vector<32x128xf32>
    %23 = vector.broadcast %20 : vector<32x1xf32> to vector<32x128xf32>
    %24 = arith.mulf %22, %23 : vector<32x128xf32>
    %c1 = arith.constant 1 : index
    %c0_10 = arith.constant 0 : index
    %25 = vector.load %arg3[%c1, %c0_10] : memref<3x128xf32, #tpu.memory_space<vmem>>, vector<1x128xf32>
    %26 = vector.broadcast %25 : vector<1x128xf32> to vector<32x128xf32>
    %27 = arith.mulf %24, %26 : vector<32x128xf32>
    %c2 = arith.constant 2 : index
    %c0_11 = arith.constant 0 : index
    %28 = vector.load %arg3[%c2, %c0_11] : memref<3x128xf32, #tpu.memory_space<vmem>>, vector<1x128xf32>
    %29 = vector.broadcast %28 : vector<1x128xf32> to vector<32x128xf32>
    %30 = arith.addf %27, %29 : vector<32x128xf32>
    %31 = arith.truncf %30 : vector<32x128xf32> to vector<32x128xbf16>
    %c0_12 = arith.constant 0 : index
    %c0_13 = arith.constant 0 : index
    %32 = vector.load %arg4[%c0_12, %c0_13] : memref<32x128xbf16, #tpu.memory_space<vmem>>, vector<32x128xbf16>
    tpu.vector_store %arg4[%c0_12, %c0_13], %31 {strides = array<i32>} : memref<32x128xbf16, #tpu.memory_space<vmem>>, vector<32x128xbf16>,
    return
  }
  func.func @transform_0(%arg0: i32) -> (i32, i32) {
    %c0_i32 = arith.constant 0 : i32
    %c0_i32_0 = arith.constant 0 : i32
    return %arg0, %c0_i32 : i32, i32
  }
  func.func @transform_1(%arg0: i32) -> (i32, i32) {
    %c0_i32 = arith.constant 0 : i32
    %c0_i32_0 = arith.constant 0 : i32
    %c0_i32_1 = arith.constant 0 : i32
    return %c0_i32, %c0_i32_0 : i32, i32
  }
  func.func @transform_2(%arg0: i32) -> (i32, i32) {
    %c0_i32 = arith.constant 0 : i32
    %c0_i32_0 = arith.constant 0 : i32
    %c0_i32_1 = arith.constant 0 : i32
    return %c0_i32, %c0_i32_0 : i32, i32
  }
  func.func @transform_3(%arg0: i32) -> (i32, i32) {
    %c0_i32 = arith.constant 0 : i32
    %c0_i32_0 = arith.constant 0 : i32
    return %arg0, %c0_i32 : i32, i32
  }
}

</mosaic_0001>

<bundles_post_ra>
// kernel: trim_layer_forward.1
= control target key start
LH: loop header
LB: loop body
LE: loop exit
PB: predicated region body
PF: predicated region fallthrough
CT: control target
= control target key end

     0   :  { %8 = vsyncpa [#allocation3], 0  ;;  %s460_s0 = inlined_call_operand.hbm [shape: f32[32,64], index: 0, kind: input, shape index: {}]   ;;  %s461_s1 = inlined_call_operand.hbm [shape: bf16[64,128], index: 1, kind: input, shape index: {}]   ;;  %s462_s2 = inlined_call_operand.vmem [shape: f32[3,128], index: 2, kind: input, shape index: {}]   ;;  %s463_s3 = inlined_call_operand.hbm [shape: bf16[32,128], index: 3, kind: output, shape index: {}]  }
   0x1   :  { %9 = vsyncpa [#allocation6], 0 }
   0x2   :  { %10 = vsyncpa [#allocation4], 0  ;;  %s15_s14 = sshll.u32 %s460_s0, 4  ;;  %s375_s15 = smov [#allocation2]   ;;  %s16_s14 = int_to_ptr.hbm [resolvable:$true] %s15_s14 }
   0x3   :  { %s17_s16 = sshll.u32 %s375_s15, 4  ;;  %s28_s19 = sshll.u32 %s461_s1, 4  ;;  %s18_s16 = int_to_ptr.vmem [resolvable:$true] %s17_s16  ;;  %s29_s19 = int_to_ptr.hbm [resolvable:$true] %s28_s19 }
   0x4   :  { %s376_s20 = smov 128   ;;  %s377_s21 = smov 8  }
   0x5   :  { %23 = dma.hbm_to_vmem [thread:$0]  %s16_s14, 512, %s18_s16, [#allocation3], %s376_s20, %s376_s20, %s377_s21  }
   0x6   :  { %s378_s22 = smov [#allocation5]   ;;  %s379_s24 = smov 64  }
   0x7   :  { %s30_s23 = sshll.u32 %s378_s22, 4  ;;  %s380_s25 = smov 4   ;;  %s31_s23 = int_to_ptr.vmem [resolvable:$true] %s30_s23 }
   0x8   :  { %36 = dma.hbm_to_vmem [thread:$0]  %s29_s19, 512, %s31_s23, [#allocation6], %s379_s24, %s379_s24, %s380_s25  }
   0x9   :  { %369 = dma.done.wait [#allocation3], 512  }
   0xa   :  { %370 = vsyncadd [#allocation3], 4294966784 }
   0xb   :  { %371 = dma.done.wait [#allocation6], 512  }
   0xc   :  { %372 = vsyncadd [#allocation6], 4294966784  ;;  %v263_v0 = vld [vmem:[#allocation5 + $0x18] sm:$0xff]  ;;  %v262_v1 = vld [vmem:[#allocation5 + $0x10] sm:$0xff]  ;;  %vm88_vm0 = vcmask 523264   ;;  %s228_s6 = sshll.u32 %s463_s3, 4  ;;  %s229_s6 = int_to_ptr.hbm [resolvable:$true] %s228_s6 }
   0xd   :  { %99 = vmatpush.bf16.msra.mxu0 %v263_v0  ;;  %275 = vmatpush.bf16.msra.mxu1 %v263_v0  ;;  %v261_v2 = vld [vmem:[#allocation5 + $0x8] sm:$0xff]  ;;  %v260_v3 = vld [vmem:[#allocation5] sm:$0xff]  ;;  %v50_v6 = vld [vmem:[#allocation2 + $0x10] sm:$0xff] }
   0xe   :  { %v48_v4 = vld [vmem:[#allocation2] sm:$0xff]  ;;  %v49_v5 = vld [vmem:[#allocation2 + $0x8] sm:$0xff]  ;;  %v51_v7 = vld [vmem:[#allocation2 + $0x18] sm:$0xff] }
   0xf   :  { %v52_v8 = vpack.c.bf16 %v49_v5, %v48_v4  ;;  %v53_v9 = vpack.c.bf16 %v51_v7, %v50_v6  ;;  %v286_v10 = vld [vmem:[%s462_s2] ss:$0 sm:$0xff]  ;;  %v287_v6 = vld [vmem:[%s462_s2 + $0x1] ss:$0 sm:$0xff] }
  0x11   :  { %100 = vmatpush.bf16.msra.mxu0 %v262_v1  ;;  %276 = vmatpush.bf16.msra.mxu1 %v262_v1 }
  0x15   :  { %101 = vmatpush.bf16.msra.mxu0 %v261_v2  ;;  %277 = vmatpush.bf16.msra.mxu1 %v261_v2 }
  0x19   :  { %102 = vmatpush.bf16.msra.mxu0 %v260_v3  ;;  %278 = vmatpush.bf16.msra.mxu1 %v260_v3 }
  0x1c   :  { %258 = vmatmul.msk.bf16.vlgmr.msra.gmra.mxu0 %vm88_vm0, %v52_v8  ;;  %259 = vmatmul.msk.bf16.vlgmr.msra.gmra.mxu1 %vm88_vm0, %v53_v9 }
  0x99   :  { %v104_v11 = vpop.f32.mrf.mxu0  ;;  %v109_v12 = vpop.f32.mrf.mxu1 }
  0x9a   :  { %v414_v13 = vadd.f32 %v286_v10, %v104_v11  ;;  %v416_v14 = vadd.f32 %v286_v10, %v109_v12 }
  0x9c   :  { %118 = vadd.xlane.f32.xlu1 %v416_v14  ;;  %114 = vadd.xlane.f32.xlu0 %v414_v13  ;;  %v126_v15 = vmul.f32 %v414_v13, %v414_v13  ;;  %v128_v22 = vmul.f32 %v416_v14, %v416_v14 }
  0x9e   :  { %130 = vadd.xlane.f32.xlu2 %v126_v15 }
  0xa1   :  { %v106_v16 = vpop.f32.mrf.mxu0  ;;  %v111_v17 = vpop.f32.mrf.mxu1 }
  0xa2   :  { %v422_v18 = vadd.f32 %v286_v10, %v106_v16  ;;  %v424_v19 = vadd.f32 %v286_v10, %v111_v17  ;;  %v288_v17 = vld [vmem:[%s462_s2 + $0x2] ss:$0 sm:$0xff]  ;;  %s381_s2 = smov [#allocation7]  }
  0xa3   :  { %s226_s30 = sshll.u32 %s381_s2, 4  ;;  %s227_s30 = int_to_ptr.vmem [resolvable:$true] %s226_s30 }
  0xa4   :  { %120 = vadd.xlane.f32.xlu1 %v424_v19  ;;  %116 = vadd.xlane.f32.xlu0 %v422_v18  ;;  %v127_v20 = vmul.f32 %v422_v18, %v422_v18  ;;  %v129_v21 = vmul.f32 %v424_v19, %v424_v19 }
  0xa6   :  { %132 = vadd.xlane.f32.xlu2 %v127_v20 }
  0xac   :  { %136 = vadd.xlane.f32.xlu1 %v129_v21  ;;  %134 = vadd.xlane.f32.xlu0 %v128_v22 }
 0x10f   :  { %v119_v23 = vpop.xlane.xlu1 %118  ;;  %v115_v24 = vpop.xlane.xlu0 %114 }
 0x110   :  { %v122_v25 = vmul.f32 0.0078125, %v115_v24  ;;  %v434_v36 = vmul.f32 0.0078125, %v119_v23 }
 0x111   :  { %v131_v26 = vpop.xlane.xlu2 %130 }
 0x112   :  { %v142_v27 = vmul.f32 %v122_v25, %v122_v25  ;;  %v138_v28 = vmul.f32 0.0078125, %v131_v26  ;;  %v144_v41 = vmul.f32 %v434_v36, %v434_v36  ;;  %v194_v0 = vsub.f32 %v414_v13, %v122_v25 }
 0x113   :  { %v196_v24 = vsub.f32 %v416_v14, %v434_v36 }
 0x114   :  { %v146_v29 = vsub.f32 %v138_v28, %v142_v27 }
 0x116   :  { %v150_v30 = vadd.f32 1e-05, %v146_v29 }
 0x117   :  { %v121_v31 = vpop.xlane.xlu1 %120  ;;  %v117_v32 = vpop.xlane.xlu0 %116 }
 0x118   :  { %v123_v33 = vmul.f32 0.0078125, %v117_v32  ;;  %289 = vrsqrt.f32 %v150_v30  ;;  %v436_v38 = vmul.f32 0.0078125, %v121_v31  ;;  %vm160_vm2 = vweird.f32 %v150_v30 }
 0x119   :  { %v133_v34 = vpop.xlane.xlu2 %132 }
 0x11a   :  { %v143_v35 = vmul.f32 %v123_v33, %v123_v33  ;;  %v139_v37 = vmul.f32 0.0078125, %v133_v34  ;;  %v145_v46 = vmul.f32 %v436_v38, %v436_v38  ;;  %v195_v9 = vsub.f32 %v422_v18, %v123_v33 }
 0x11b   :  { %v197_v18 = vsub.f32 %v424_v19, %v436_v38 }
 0x11c   :  { %v147_v39 = vsub.f32 %v139_v37, %v143_v35 }
 0x11e   :  { %v290_v40 = vpop.eup %289  ;;  %v151_v42 = vadd.f32 1e-05, %v147_v39 }
 0x11f   :  { %v137_v43 = vpop.xlane.xlu1 %136  ;;  %v135_v44 = vpop.xlane.xlu0 %134  ;;  %v155_v45 = vmul.f32 %v290_v40, %v150_v30  ;;  %vm161_vm1 = vweird.f32 %v290_v40 }
 0x120   :  { %v141_v47 = vmul.f32 0.0078125, %v137_v43  ;;  %v140_v48 = vmul.f32 0.0078125, %v135_v44  ;;  %291 = vrsqrt.f32 %v151_v42  ;;  %vm162_vm3 = vmor %vm160_vm2, %vm161_vm1  ;;  %vm170_vm5 = vweird.f32 %v151_v42 }
 0x121   :  { %v156_v49 = vmul.f32 %v290_v40, %v155_v45 }
 0x122   :  { %v149_v50 = vsub.f32 %v141_v47, %v145_v46  ;;  %v148_v51 = vsub.f32 %v140_v48, %v144_v41 }
 0x123   :  { %v157_v52 = vmul.f32 0.5, %v156_v49 }
 0x124   :  { %v153_v53 = vadd.f32 1e-05, %v149_v50  ;;  %v152_v54 = vadd.f32 1e-05, %v148_v51 }
 0x125   :  { %v158_v55 = vsub.f32 1.5, %v157_v52 }
 0x126   :  { %293 = vrsqrt.f32 %v153_v53  ;;  %v292_v56 = vpop.eup %291  ;;  %vm190_vm9 = vweird.f32 %v153_v53  ;;  %vm180_vm11 = vweird.f32 %v152_v54 }
 0x127   :  { %295 = vrsqrt.f32 %v152_v54  ;;  %v159_v57 = vmul.f32 %v290_v40, %v158_v55  ;;  %v165_v58 = vmul.f32 %v292_v56, %v151_v42  ;;  %vm171_vm4 = vweird.f32 %v292_v56 }
 0x128   :  { %vm172_vm6 = vmor %vm170_vm5, %vm171_vm4 }
 0x129   :  { %v166_v59 = vmul.f32 %v292_v56, %v165_v58  ;;  %v163_v61 = vsel %vm162_vm3, %v290_v40, %v159_v57 }
 0x12a   :  { %v198_v4 = vmul.f32 %v194_v0, %v163_v61 }
 0x12b   :  { %v167_v62 = vmul.f32 0.5, %v166_v59 }
 0x12c   :  { %v294_v60 = vpop.eup %293  ;;  %v204_v16 = vmul.f32 %v287_v6, %v198_v4 }
 0x12d   :  { %v296_v63 = vpop.eup %295  ;;  %v185_v1 = vmul.f32 %v294_v60, %v153_v53  ;;  %v168_v2 = vsub.f32 1.5, %v167_v62  ;;  %vm191_vm7 = vweird.f32 %v294_v60 }
 0x12e   :  { %v175_v3 = vmul.f32 %v296_v63, %v152_v54  ;;  %vm181_vm8 = vweird.f32 %v296_v63  ;;  %vm192_vm10 = vmor %vm190_vm9, %vm191_vm7  ;;  %v210_v26 = vadd.f32 %v288_v17, %v204_v16 }
 0x12f   :  { %v186_v5 = vmul.f32 %v294_v60, %v185_v1  ;;  %v169_v7 = vmul.f32 %v292_v56, %v168_v2  ;;  %vm182_vm12 = vmor %vm180_vm11, %vm181_vm8 }
 0x130   :  { %v176_v8 = vmul.f32 %v296_v63, %v175_v3 }
 0x131   :  { %v187_v10 = vmul.f32 0.5, %v186_v5  ;;  %v173_v11 = vsel %vm172_vm6, %v292_v56, %v169_v7 }
 0x132   :  { %v177_v12 = vmul.f32 0.5, %v176_v8  ;;  %v199_v13 = vmul.f32 %v195_v9, %v173_v11 }
 0x133   :  { %v188_v15 = vsub.f32 1.5, %v187_v10 }
 0x134   :  { %v178_v20 = vsub.f32 1.5, %v177_v12  ;;  %v205_v22 = vmul.f32 %v287_v6, %v199_v13 }
 0x135   :  { %v189_v21 = vmul.f32 %v294_v60, %v188_v15 }
 0x136   :  { %v179_v23 = vmul.f32 %v296_v63, %v178_v20  ;;  %v211_v27 = vadd.f32 %v288_v17, %v205_v22 }
 0x137   :  { %v193_v25 = vsel %vm192_vm10, %v294_v60, %v189_v21 }
 0x138   :  { %v201_v28 = vmul.f32 %v197_v18, %v193_v25  ;;  %v183_v29 = vsel %vm182_vm12, %v296_v63, %v179_v23  ;;  %v267_v31 = vpack.c.bf16 %v211_v27, %v210_v26 }
 0x139   :  { %v200_v30 = vmul.f32 %v196_v24, %v183_v29 }
 0x13a   :  { %v207_v32 = vmul.f32 %v287_v6, %v201_v28  ;;  %268 = vst [vmem:[#allocation7] sm:$0xff] %v267_v31  }
 0x13b   :  { %v206_v33 = vmul.f32 %v287_v6, %v200_v30 }
 0x13c   :  { %v213_v34 = vadd.f32 %v288_v17, %v207_v32 }
 0x13d   :  { %v212_v19 = vadd.f32 %v288_v17, %v206_v33 }
 0x13f   :  { %v272_v14 = vpack.c.bf16 %v213_v34, %v212_v19 }
 0x141   :  { %274 = vst [vmem:[#allocation7 + $0x8] sm:$0xff] %v272_v14  }
 0x142   :  { %234 = dma.vmem_to_hbm [thread:$0]  %s227_s30, 256, %s229_s6, [#allocation4], %s379_s24, %s379_s24, %s380_s25  }
 0x143   :  { %373 = dma.done.wait [#allocation4], 256  }
 0x144   :  { %374 = vsyncadd [#allocation4], 4294967040 }
 0x145   :  { %239 = vsyncpa [#allocation3], 1 }
 0x146   :  { %240 = vsyncpa [#allocation6], 1 }
 0x147   :  { %241 = vsyncpa [#allocation4], 1 }

</bundles_post_ra>
